<compile_context>
chip_gen: v7x
topology: tpu7x:2x2x1
jax: 0.10.0
libtpu: 0.0.40
codegen_flags: <defaults>
</compile_context>

<pallas_src>
import jax
import jax.numpy as jnp
from jax.experimental import pallas as pl
from jax.experimental.pallas import tpu as pltpu


def _round_up(a, m):
    return (a + m - 1) // m * m


def _head_kernel(x_ref, w1_ref, b1_ref, w2_ref, b2_ref, out_ref):
    # x arrives as f32 straight from HBM; cast to bf16 on the VPU here (hidden
    # under the DMA pipeline) instead of paying an un-fused wrapper pass.
    x_bf = x_ref[...].astype(jnp.bfloat16)

    # Fused (frozen projection + classifier layer 1): bf16 MXU, f32 accumulation.
    h = jnp.dot(x_bf, w1_ref[...], preferred_element_type=jnp.float32) + b1_ref[...]
    h = jnp.maximum(h, 0.0)

    # TODO(synk): nn.Dropout(0.1) is stochastic and train-only; identity in eval mode.

    # Classifier layer 2 (H -> 1): contract (1,H)·(TB,H)^T so the result lands
    # lane-dense as a (1, TB) row -> unmasked vst + dense writeback DMA.
    # Padded hidden columns are exactly zero (zero weight, zero bias, relu(0)=0).
    logit = jax.lax.dot_general(
        w2_ref[...], h,
        dimension_numbers=(((1,), (1,)), ((), ())),
        preferred_element_type=jnp.float32,
    ) + b2_ref[...]
    out_ref[...] = jax.nn.sigmoid(logit).astype(out_ref.dtype)


def fold_params(wp, bp, w1, b1, w2, b2):
    """Fold the frozen projection into classifier layer 1 and lane-pad the hidden dim.

    Call ONCE (the projection is frozen) and reuse the result across forwards so the
    per-call path carries no un-pipelined matmul / cast work.

    wp : [D_in, D]   frozen projection weight (transposed vs torch)
    bp : [1, D]      frozen projection bias
    w1 : [D, H]      classifier layer-1 weight (transposed vs torch), H = D // 2
    b1 : [1, H]      classifier layer-1 bias
    w2 : [H, 1]      classifier layer-2 weight (transposed vs torch)
    b2 : [1, 1]      classifier layer-2 bias
    """
    H = w1.shape[1]
    H_pad = _round_up(max(H, 128), 128)

    w1f = w1.astype(jnp.float32)
    w_fused = wp.astype(jnp.float32) @ w1f                       # [D_in, H]
    b_fused = bp.astype(jnp.float32) @ w1f + b1.astype(jnp.float32)   # [1, H]
    w2_row = w2.reshape(1, H).astype(jnp.float32)                # [1, H]

    pad = H_pad - H
    if pad:
        w_fused = jnp.pad(w_fused, ((0, 0), (0, pad)))
        b_fused = jnp.pad(b_fused, ((0, 0), (0, pad)))
        w2_row = jnp.pad(w2_row, ((0, 0), (0, pad)))

    return (w_fused.astype(jnp.bfloat16),        # HBM-resident weight in bf16
            b_fused.astype(jnp.float32),
            w2_row,
            b2.reshape(1, 1).astype(jnp.float32))


def _choose_tiles(B, D_in, x_tile_bytes):
    """Pick the batch tile by BYTES of f32 x (~0.5-2 MiB is the measured sweet spot),
    lane-aligned (128) so the (1, TB) output block is unmasked, with minimal padding."""
    rows = max(128, x_tile_bytes // max(1, D_in * 4))
    rows = _round_up(rows, 128)
    if rows >= B:
        tb = _round_up(B, 8)          # single tile; sublane-align only
        return tb, tb, 1
    n_tiles = pl.cdiv(B, rows)
    tb = _round_up(pl.cdiv(B, n_tiles), 128)   # spread B evenly -> padding < 128 rows
    return tb, tb * n_tiles, n_tiles


def contrastive_classifier_head(x, folded, *, x_tile_bytes=2 << 20):
    """Fused (frozen projection + classifier) head. x: [B, D_in] -> [B] probabilities."""
    w_fused, b_fused, w2_row, b2r = folded
    B, D_in = x.shape
    H_pad = w_fused.shape[1]

    TB, B_pad, n_tiles = _choose_tiles(B, D_in, x_tile_bytes)

    x_in = x.astype(jnp.float32)      # no-op if already f32; NO wrapper bf16 pass
    if B_pad != B:
        x_in = jnp.pad(x_in, ((0, B_pad - B), (0, 0)))

    # VMEM budget: x double-buffered (f32), weight single-buffered (Buffered(1)),
    # small biases + (1, TB) output, plus headroom. Clamp to 64 MiB (valid on v7x too).
    vmem_bytes = (2 * TB * D_in * 4          # x tiles (double-buffered)
                  + D_in * H_pad * 2         # resident bf16 fused weight
                  + 3 * H_pad * 4            # biases / w2 row
                  + 2 * TB * 4               # output rows
                  + (2 << 20))               # scratch headroom
    vmem_limit = min(max(vmem_bytes * 5 // 4, 16 << 20), 64 << 20)

    out = pl.pallas_call(
        _head_kernel,
        out_shape=jax.ShapeDtypeStruct((1, B_pad), jnp.float32),
        grid=(n_tiles,),
        in_specs=[
            pl.BlockSpec((TB, D_in), lambda i: (i, 0)),                # x: tiled over batch
            pl.BlockSpec((D_in, H_pad), lambda i: (0, 0),
                         pipeline_mode=pl.Buffered(1)),                # fused weight: resident
            pl.BlockSpec((1, H_pad), lambda i: (0, 0),
                         pipeline_mode=pl.Buffered(1)),                # fused bias: resident
            pl.BlockSpec((1, H_pad), lambda i: (0, 0),
                         pipeline_mode=pl.Buffered(1)),                # w2 row: resident
            pl.BlockSpec((1, 1), lambda i: (0, 0),
                         pipeline_mode=pl.Buffered(1)),                # b2: resident
        ],
        out_specs=pl.BlockSpec((1, TB), lambda i: (0, i)),             # lane-dense output row
        compiler_params=pltpu.CompilerParams(
            dimension_semantics=("parallel",),
            vmem_limit_bytes=vmem_limit,
        ),
    )(x_in, w_fused, b_fused, w2_row, b2r)

    return out[0, :B]     # drop batch padding + squeeze(-1)


def _reference(x, wp, bp, w1, b1, w2, b2):
    # Pure-f32 un-fused reference matching the PyTorch forward (eval mode).
    proj = x @ wp + bp
    h = jnp.maximum(proj @ w1 + b1, 0.0)
    logit = h @ w2 + b2
    return jax.nn.sigmoid(logit)[:, 0]


if __name__ == "__main__":
    # Small shapes consistent with the module's forward.
    B, D_in, D = 8, 32, 32          # output_dim = D = 32, hidden = D // 2 = 16
    H = D // 2

    key = jax.random.PRNGKey(0)
    ks = jax.random.split(key, 7)
    x = jax.random.normal(ks[0], (B, D_in), dtype=jnp.float32)

    # Deterministic synthetic parameters (no checkpoint loading).
    wp = jax.random.normal(ks[1], (D_in, D), dtype=jnp.float32) * 0.1
    bp = jax.random.normal(ks[2], (1, D), dtype=jnp.float32) * 0.1
    w1 = jax.random.normal(ks[3], (D, H), dtype=jnp.float32) * 0.1
    b1 = jax.random.normal(ks[4], (1, H), dtype=jnp.float32) * 0.1
    w2 = jax.random.normal(ks[5], (H, 1), dtype=jnp.float32) * 0.1
    b2 = jax.random.normal(ks[6], (1, 1), dtype=jnp.float32) * 0.1

    # Weight fold happens ONCE (frozen projection), off the per-call path.
    folded = jax.tree_util.tree_map(jax.block_until_ready,
                                    fold_params(wp, bp, w1, b1, w2, b2))

    y = contrastive_classifier_head(x, folded)
    y = jax.block_until_ready(y)

    y_ref = _reference(x, wp, bp, w1, b1, w2, b2)
    assert y.shape == (B,), y.shape
    # bf16 x / bf16 folded weight perturb low-order bits vs the f32 reference;
    # sigmoid outputs agree to well under 1e-2.
    assert jnp.allclose(y, y_ref, atol=1e-2, rtol=1e-2), (y, y_ref)

    print("KERNEL_OK")
</pallas_src>

<mosaic_0001>
module attributes {stable_mosaic.version = 11 : i64} {
  func.func @_head_kernel(%arg0: i32, %arg1: memref<8x32xf32, #tpu.memory_space<vmem>>, %arg2: memref<32x128xbf16, #tpu.memory_space<vmem>>, %arg3: memref<1x128xf32, #tpu.memory_space<vmem>>, %arg4: memref<1x128xf32, #tpu.memory_space<vmem>>, %arg5: memref<1x1xf32, #tpu.memory_space<vmem>>, %arg6: memref<1x8xf32, #tpu.memory_space<vmem>>) attributes {dimension_semantics = [#tpu.dimension_semantics<parallel>], iteration_bounds = array<i64: 1>, scalar_prefetch = 0 : i64, scratch_operands = 0 : i64, tpu.core_type = #tpu.core_type<tc>, window_params = [{transform_indices = @transform_0, window_bounds = array<i64: 8, 32>}, {pipeline_mode = #tpu.pipeline_mode<synchronous>, transform_indices = @transform_1, window_bounds = array<i64: 32, 128>}, {pipeline_mode = #tpu.pipeline_mode<synchronous>, transform_indices = @transform_2, window_bounds = array<i64: 1, 128>}, {pipeline_mode = #tpu.pipeline_mode<synchronous>, transform_indices = @transform_3, window_bounds = array<i64: 1, 128>}, {pipeline_mode = #tpu.pipeline_mode<synchronous>, transform_indices = @transform_4, window_bounds = array<i64: 1, 1>}, {transform_indices = @transform_5, window_bounds = array<i64: 1, 8>}]} {
    %c0 = arith.constant 0 : index
    %c0_0 = arith.constant 0 : index
    %0 = vector.load %arg1[%c0, %c0_0] : memref<8x32xf32, #tpu.memory_space<vmem>>, vector<8x32xf32>
    %1 = arith.truncf %0 : vector<8x32xf32> to vector<8x32xbf16>
    %c0_1 = arith.constant 0 : index
    %c0_2 = arith.constant 0 : index
    %2 = vector.load %arg2[%c0_1, %c0_2] : memref<32x128xbf16, #tpu.memory_space<vmem>>, vector<32x128xbf16>
    %cst = arith.constant dense<0.000000e+00> : vector<8x128xf32>
    %3 = tpu.matmul %1, %2, %cst {dimension_numbers = #tpu.dot_dimension_numbers<[1], [0], [0], [1], [0, 0, 1, 1], [], []>} : vector<8x32xbf16>, vector<32x128xbf16>, vector<8x128xf32> -> vector<8x128xf32>
    %c0_3 = arith.constant 0 : index
    %c0_4 = arith.constant 0 : index
    %4 = vector.load %arg3[%c0_3, %c0_4] : memref<1x128xf32, #tpu.memory_space<vmem>>, vector<1x128xf32>
    %5 = vector.broadcast %4 : vector<1x128xf32> to vector<8x128xf32>
    %6 = arith.addf %3, %5 : vector<8x128xf32>
    %cst_5 = arith.constant 0.000000e+00 : f32
    %7 = vector.broadcast %cst_5 : f32 to vector<8x128xf32>
    %8 = arith.maximumf %6, %7 : vector<8x128xf32>
    %c0_6 = arith.constant 0 : index
    %c0_7 = arith.constant 0 : index
    %9 = vector.load %arg4[%c0_6, %c0_7] : memref<1x128xf32, #tpu.memory_space<vmem>>, vector<1x128xf32>
    %cst_8 = arith.constant dense<0.000000e+00> : vector<1x8xf32>
    %10 = tpu.matmul %9, %8, %cst_8 {dimension_numbers = #tpu.dot_dimension_numbers<[1], [1], [0], [0], [0, 0, 1, 0], [], []>} : vector<1x128xf32>, vector<8x128xf32>, vector<1x8xf32> -> vector<1x8xf32>
    %c0_9 = arith.constant 0 : index
    %c0_10 = arith.constant 0 : index
    %11 = vector.load %arg5[%c0_9, %c0_10] : memref<1x1xf32, #tpu.memory_space<vmem>>, vector<1x1xf32>
    %12 = vector.broadcast %11 : vector<1x1xf32> to vector<1x8xf32>
    %13 = arith.addf %10, %12 : vector<1x8xf32>
    %14 = arith.negf %13 : vector<1x8xf32>
    %15 = math.exp %14 : vector<1x8xf32>
    %cst_11 = arith.constant 1.000000e+00 : f32
    %16 = vector.broadcast %cst_11 : f32 to vector<1x8xf32>
    %17 = arith.addf %16, %15 : vector<1x8xf32>
    %18 = arith.divf %16, %17 : vector<1x8xf32>
    %c0_12 = arith.constant 0 : index
    %c0_13 = arith.constant 0 : index
    %19 = vector.load %arg6[%c0_12, %c0_13] : memref<1x8xf32, #tpu.memory_space<vmem>>, vector<1x8xf32>
    tpu.vector_store %arg6[%c0_12, %c0_13], %18 {strides = array<i32>} : memref<1x8xf32, #tpu.memory_space<vmem>>, vector<1x8xf32>,
    return
  }
  func.func @transform_0(%arg0: i32) -> (i32, i32) {
    %c0_i32 = arith.constant 0 : i32
    %c0_i32_0 = arith.constant 0 : i32
    return %arg0, %c0_i32 : i32, i32
  }
  func.func @transform_1(%arg0: i32) -> (i32, i32) {
    %c0_i32 = arith.constant 0 : i32
    %c0_i32_0 = arith.constant 0 : i32
    %c0_i32_1 = arith.constant 0 : i32
    return %c0_i32, %c0_i32_0 : i32, i32
  }
  func.func @transform_2(%arg0: i32) -> (i32, i32) {
    %c0_i32 = arith.constant 0 : i32
    %c0_i32_0 = arith.constant 0 : i32
    %c0_i32_1 = arith.constant 0 : i32
    return %c0_i32, %c0_i32_0 : i32, i32
  }
  func.func @transform_3(%arg0: i32) -> (i32, i32) {
    %c0_i32 = arith.constant 0 : i32
    %c0_i32_0 = arith.constant 0 : i32
    %c0_i32_1 = arith.constant 0 : i32
    return %c0_i32, %c0_i32_0 : i32, i32
  }
  func.func @transform_4(%arg0: i32) -> (i32, i32) {
    %c0_i32 = arith.constant 0 : i32
    %c0_i32_0 = arith.constant 0 : i32
    %c0_i32_1 = arith.constant 0 : i32
    return %c0_i32, %c0_i32_0 : i32, i32
  }
  func.func @transform_5(%arg0: i32) -> (i32, i32) {
    %c0_i32 = arith.constant 0 : i32
    %c0_i32_0 = arith.constant 0 : i32
    return %c0_i32, %arg0 : i32, i32
  }
}

</mosaic_0001>

<bundles_post_ra>
// kernel: tpu_custom_call.1
= control target key start
LH: loop header
LB: loop body
LE: loop exit
PB: predicated region body
PF: predicated region fallthrough
CT: control target
= control target key end

     0   :  { %s425_s0 = inlined_call_operand.hbm [shape: f32[8,32], index: 0, kind: input, shape index: {}]   ;;  %s426_s1 = inlined_call_operand.hbm [shape: bf16[32,128], index: 1, kind: input, shape index: {}]   ;;  %s427_s2 = inlined_call_operand.vmem [shape: f32[1,128], index: 2, kind: input, shape index: {}]   ;;  %s428_s3 = inlined_call_operand.vmem [shape: f32[1,128], index: 3, kind: input, shape index: {}]   ;;  %s429_s4 = inlined_call_operand.<no memory space> [shape: f32[1,1], index: 4, kind: input, shape index: {}]   ;;  %s430_s5 = inlined_call_operand.hbm [shape: f32[1,8], index: 5, kind: output, shape index: {}]  }
   0x1   :  { %v10_v0 = vstv %s429_s4 }
   0x2   :  { %11 = vst [vmem:[#allocation2] sm:$0x1] %v10_v0 }
   0x3   :  { %12 = vsyncpa [#allocation4], 0 }
   0x4   :  { %13 = vsyncpa [#allocation7], 0 }
   0x5   :  { %14 = vsyncpa [#allocation5], 0  ;;  %s335_s20 = smov [#allocation3]   ;;  %s336_s22 = smov [#allocation6]  }
   0x6   :  { %s21_s21 = sshll.u32 %s335_s20, 4  ;;  %s30_s23 = sshll.u32 %s336_s22, 4  ;;  %s22_s21 = int_to_ptr.vmem [resolvable:$true] %s21_s21  ;;  %s376_s23 = int_to_ptr.vmem [resolvable:$true] %s30_s23 }
   0x7   :  { %s263_s26 = scalar_lea.hbm %s425_s0, 128 }
   0x8   :  { %p264_p0 = scmp.ne.s32.totalorder %s425_s0, %s263_s26  ;;  %p267_p1 = scmp.lt.u32.totalorder %s263_s26, %s425_s0 }
   0xa   :  { %p269_p2 = pnand %p267_p1, %p264_p0 }
   0xc   :  { %272 = shalt.err (!%p269_p2)
}
   0xd   :  { %s273_s30 = scalar_lea.vmem %s22_s21, 128  ;;  %p278_p4 = scmp.lt.s32.totalorder %s22_s21, %s22_s21 }
   0xe   :  { %p274_p3 = scmp.ne.s32.totalorder %s22_s21, %s273_s30  ;;  %p279_p5 = scmp.lt.s32.totalorder %s273_s30, %s273_s30 }
  0x10   :  { %p280_p6 = por %p279_p5, %p278_p4 }
  0x12   :  { %p281_p7 = pnand %p280_p6, %p274_p3 }
  0x14   :  { %284 = shalt.err (!%p281_p7)
}
  0x15   :  { %24 = dma.hbm_to_vmem [thread:$0]  %s425_s0, 128, %s22_s21, [#allocation4]  }
  0x16   :  { %s285_s10 = scalar_lea.hbm %s426_s1, 256 }
  0x17   :  { %p286_p8 = scmp.ne.s32.totalorder %s426_s1, %s285_s10  ;;  %p289_p9 = scmp.lt.u32.totalorder %s285_s10, %s426_s1 }
  0x19   :  { %p291_p10 = pnand %p289_p9, %p286_p8 }
  0x1b   :  { %294 = shalt.err (!%p291_p10)
}
  0x1c   :  { %s295_s15 = scalar_lea.vmem %s376_s23, 256  ;;  %p300_p12 = scmp.lt.s32.totalorder %s376_s23, %s376_s23 }
  0x1d   :  { %p296_p11 = scmp.ne.s32.totalorder %s376_s23, %s295_s15  ;;  %p301_p13 = scmp.lt.s32.totalorder %s295_s15, %s295_s15 }
  0x1f   :  { %p302_p0 = por %p301_p13, %p300_p12 }
  0x21   :  { %p303_p1 = pnand %p302_p0, %p296_p11 }
  0x23   :  { %306 = shalt.err (!%p303_p1)
}
  0x24   :  { %s337_s0 = smov 64   ;;  %s338_s16 = smov 4  }
  0x25   :  { %36 = dma.hbm_to_vmem [thread:$0]  %s426_s1, 256, %s376_s23, [#allocation7], %s337_s0, %s337_s0, %s338_s16  }
  0x26   :  { %329 = dma.done.wait [#allocation4], 128  }
  0x27   :  { %330 = vsyncadd [#allocation4], 4294967168 }
  0x28   :  { %331 = dma.done.wait [#allocation7], 256  }
  0x29   :  { %332 = vsyncadd [#allocation7], 4294967040  ;;  %v339_v1 = vmov 0.0   ;;  %vm340_vm0 = vmmov 0   ;;  %v257_v2 = vld [vmem:[#allocation6] sm:$0xff]   ;;  %v258_v3 = vld [vmem:[#allocation6 + $0x8] sm:$0xff]   ;;  %v127_v16 = vlaneseq }
  0x2a   :  { %235 = vmatprep.subr.bf16.mxu0 %v339_v1  ;;  %239 = vmatprep.mubr.msk.bf16.mxu0 %vm340_vm0, %v339_v1  ;;  %v50_v4 = vld [vmem:[#allocation3] sm:$0xff]  ;;  %vm75_vm1 = vcmask 261120   ;;  %v121_v6 = vld [vmem:[#allocation2] sm:$0x1]  ;;  %v341_v7 = vmov 0   ;;  %vm207_vm2 = vcmask 57344  }
  0x2b   :  { %243 = vmatprep.subr.mxu1 %v339_v1  ;;  %245 = vmatprep.mubr.msk.f32.mxu1 %vm340_vm0, %v339_v1  ;;  %v51_v5 = vpack.c.bf16 %v50_v4, %v50_v4  ;;  %v225_v8 = vld [vmem:[%s427_s2] ss:$0 sm:$0xff]  ;;  %v128_v17 = vshrl.u32 %v127_v16, 7  ;;  %s342_s2 = smov [#allocation8]  }
  0x2c   :  { %236 = vmatpush3.bf16.msra.mxu0 %v257_v2  ;;  %256 = vset.pattern.permute.xlu0 %v341_v7  ;;  %v120_v15 = vld [vmem:[%s428_s3] sm:$0x1]  ;;  %s215_s22 = sshll.u32 %s342_s2, 4  ;;  %s216_s22 = int_to_ptr.vmem [resolvable:$true] %s215_s22 }
  0x2d   :  { %237 = vmatprep.subr.bf16.mxu0 %v339_v1  ;;  %124 = vperm.xlu0 %256, %v121_v6   ;;  %v129_v18 = vsub.s32 0, %v128_v17  ;;  %s307_s3 = scalar_lea.vmem %s216_s22, 16  ;;  %s311_s23 = scalar_lea.vmem %s216_s22, 32 }
  0x2e   :  { %p308_p2 = scmp.ne.s32.totalorder %s216_s22, %s307_s3  ;;  %p312_p3 = scmp.lt.s32.totalorder %s216_s22, %s216_s22 }
  0x2f   :  { %p313_p4 = scmp.lt.s32.totalorder %s311_s23, %s307_s3 }
  0x30   :  { %238 = vmatpush3.bf16.msra.mxu0 %v258_v3 }
  0x31   :  { %p314_p5 = por %p313_p4, %p312_p3 }
  0x33   :  { %240 = vmatmul.mubr.msk.bf16.vlgmr.msra.gmra.mrb[0].mxu0 %vm75_vm1, %v51_v5  ;;  %p315_p6 = pnand %p314_p5, %p308_p2 }
  0xac   :  { %v125_v19 = vpop.permute.xlu0 %124 }
  0xad   :  { %v130_v20 = vrot.slane %v125_v19, %v129_v18 }
 0x106   :  { %v113_v9 = vpop.f32.mrb[0].mxu0 }
 0x107   :  { %v114_v10 = vadd.f32 %v225_v8, %v113_v9  ;;  %v241_v11 = vpop.f32.mrb[1].mxu0 }
 0x108   :  { %v116_v12 = vpop.f32.mrb[2].mxu0 }
 0x109   :  { %v119_v13 = vmax.f32 %v114_v10, 0.0  ;;  %v242_v14 = vpop.f32.mrb[3].mxu0 }
 0x10b   :  { %244 = vmatpush3.xpose.msra.mxu1 %v119_v13 }
 0x10e   :  { %246 = vmatmul.mubr.f32.vlgmr.msra.gmra.mrb[0].mxu1 %v120_v15 }
 0x1e1   :  { %v197_v21 = vpop.f32.mrb[0].mxu1 }
 0x1e2   :  { %v198_v22 = vadd.f32 %v197_v21, %v130_v20  ;;  %v247_v23 = vpop.f32.mrb[1].mxu1 }
 0x1e4   :  { %v229_v24 = vmul.f32 -1.442695, %v198_v22 }
 0x1e6   :  { %259 = vpow2.f32 %v229_v24 }
 0x1f0   :  { %v260_v25 = vpop.eup %259 }
 0x1f1   :  { %v204_v26 = vadd.f32 1.0, %v260_v25 }
 0x1f3   :  { %261 = vrcp.f32 %v204_v26 }
 0x1fd   :  { %v262_v27 = vpop.eup %261 }
 0x1fe   :  { %208 = vst.msk [vmem:[#allocation8] sm:$0x1] %vm207_vm2, %v262_v27 }
 0x1ff   :  { %318 = shalt.err (!%p315_p6)
}
 0x200   :  { %s319_s26 = scalar_lea.hbm %s430_s5, 16 }
 0x201   :  { %p320_p7 = scmp.ne.s32.totalorder %s430_s5, %s319_s26  ;;  %p323_p8 = scmp.lt.u32.totalorder %s319_s26, %s430_s5 }
 0x203   :  { %p325_p9 = pnand %p323_p8, %p320_p7 }
 0x205   :  { %328 = shalt.err (!%p325_p9)
}
 0x206   :  { %218 = dma.vmem_to_hbm [thread:$0]  %s216_s22, 16, %s430_s5, [#allocation5]  }
 0x207   :  { %333 = dma.done.wait [#allocation5], 16  }
 0x208   :  { %334 = vsyncadd [#allocation5], 4294967280 }
 0x209   :  { %222 = vsyncpa [#allocation4], 1 }
 0x20a   :  { %223 = vsyncpa [#allocation7], 1 }
 0x20b   :  { %224 = vsyncpa [#allocation5], 1 }

</bundles_post_ra>
